<compile_context>
chip_gen: v7x
topology: tpu7x:2x2x1
jax: 0.10.0
libtpu: 0.0.40
codegen_flags: <defaults>
</compile_context>

<pallas_src>
import jax
import jax.numpy as jnp
from jax.experimental import pallas as pl
from jax.experimental.pallas import tpu as pltpu


def _round_up(a, m):
    return (a + m - 1) // m * m


def mlp_sigmoid_kernel(x_ref, w1_ref, b1_ref, w2_ref, b2_ref,
                       w3_ref, b3_ref, w4_ref, b4_ref, o_ref):
    cdt = w1_ref.dtype  # MXU operand dtype (bf16 by default, f32 optional)

    # Cast the activation tile in-kernel (cheap VPU cast) so the x HBM stream
    # stays in its original dtype -- no extra host-side pass over x.
    x = x_ref[...].astype(cdt)

    # Layers 1..3: Linear + ReLU. MXU matmuls accumulate in f32; every
    # elementwise op (bias add, ReLU) stays f32 (v5e has no bf16 VPU).
    h = jnp.dot(x, w1_ref[...], preferred_element_type=jnp.float32)
    h = jnp.maximum(h + b1_ref[...], 0.0)
    h = jnp.dot(h.astype(cdt), w2_ref[...], preferred_element_type=jnp.float32)
    h = jnp.maximum(h + b2_ref[...], 0.0)
    h = jnp.dot(h.astype(cdt), w3_ref[...], preferred_element_type=jnp.float32)
    h = jnp.maximum(h + b3_ref[...], 0.0)

    # Head: Linear(32 -> 1) + Sigmoid.  N=1, K=32 is a degenerate MXU pass, so
    # use a VPU multiply + cross-lane (XLU) reduce; w4 arrives as a (1, 32) row.
    logits = jnp.sum(h * w4_ref[...].astype(jnp.float32),
                     axis=-1, keepdims=True)            # (tile_b, 1) f32
    logits = logits + b4_ref[0, 0]                       # scalar bias from SMEM

    # Lane-dense store: relayout the (tile_b, 1) column into a (1, tile_b) row
    # so writeback uses dense vector stores. (For tile_b < 128 the store is
    # lane-masked regardless; the relayout is still correct and cheap.)
    o_ref[...] = jax.nn.sigmoid(logits).reshape(1, -1)


def mlp_sigmoid_head(x, params, *, max_tile_b=4096, compute_dtype=jnp.bfloat16):
    """x: [B, input_size]. Returns [B, 1] float32 (sigmoid probabilities)."""
    B, in_dim = x.shape

    # Batch tiling -- no host-side padding. Small batches run as one block;
    # large batches use up-to-4096-row tiles with an even number of grid steps
    # (so the "parallel" axis balances across v7x's two TensorCores). Pallas
    # masks the ragged final tile on writeback.
    if B <= max_tile_b:
        tile_b, n_blk = B, 1
    else:
        n_blk = pl.cdiv(B, max_tile_b)
        n_blk = _round_up(n_blk, 2)                    # even step count (v7x megacore)
        tile_b = _round_up(pl.cdiv(B, n_blk), 128)     # multiple of 128 lanes / 16 sublanes
        n_blk = pl.cdiv(B, tile_b)

    # Weights are tiny -- cast them once host-side; x stays in its input dtype.
    w1 = params["w1"].astype(compute_dtype)
    w2 = params["w2"].astype(compute_dtype)
    w3 = params["w3"].astype(compute_dtype)
    w4 = params["w4"].reshape(1, -1).astype(compute_dtype)   # (1, 32) row for VPU head
    b1, b2, b3, b4 = params["b1"], params["b2"], params["b3"], params["b4"]

    def const_spec(shape):
        # Whole tensor, constant index map => DMA'd once, never refetched.
        return pl.BlockSpec(shape, lambda i: (0,) * len(shape))

    flops = 2 * B * (in_dim * 128 + 128 * 64 + 64 * 32 + 32 * 1)
    bytes_accessed = (int(x.size) * x.dtype.itemsize
                      + sum(int(params[k].size) * 4 for k in params)
                      + B * 4)
    cost = pl.CostEstimate(flops=flops, transcendentals=B,
                           bytes_accessed=bytes_accessed)

    out = pl.pallas_call(
        mlp_sigmoid_kernel,
        out_shape=jax.ShapeDtypeStruct((1, B), jnp.float32),
        grid_spec=pl.GridSpec(
            grid=(n_blk,),
            in_specs=[
                pl.BlockSpec((tile_b, in_dim), lambda i: (i, 0)),    # x tile
                const_spec(w1.shape), const_spec(b1.shape),
                const_spec(w2.shape), const_spec(b2.shape),
                const_spec(w3.shape), const_spec(b3.shape),
                const_spec(w4.shape),
                pl.BlockSpec(memory_space=pltpu.MemorySpace.SMEM),   # b4 scalar
            ],
            out_specs=pl.BlockSpec((1, tile_b), lambda i: (0, i)),   # lane-dense
        ),
        compiler_params=pltpu.CompilerParams(
            dimension_semantics=("parallel",),
            vmem_limit_bytes=32 * 1024 * 1024),   # safe headroom incl. v5e
        cost_estimate=cost,
    )(x, w1, b1, w2, b2, w3, b3, w4, b4)

    # (1, B) row -> (B, 1) column; pure metadata reshape (no data movement).
    return out.reshape(B, 1)


def init_params(key, input_size):
    """Deterministic init mirroring nn.Linear defaults (U(-1/sqrt(fan_in), ...))."""
    dims = [(input_size, 128), (128, 64), (64, 32), (32, 1)]
    params = {}
    for idx, (fan_in, fan_out) in enumerate(dims, start=1):
        key, kw, kb = jax.random.split(key, 3)
        bound = 1.0 / (fan_in ** 0.5)
        params[f"w{idx}"] = jax.random.uniform(
            kw, (fan_in, fan_out), jnp.float32, -bound, bound)
        # biases kept 2D [1, fan_out] for clean in-kernel broadcasting
        params[f"b{idx}"] = jax.random.uniform(
            kb, (1, fan_out), jnp.float32, -bound, bound)
    return params


def mlp_reference(x, params):
    h = jnp.maximum(x @ params["w1"] + params["b1"], 0.0)
    h = jnp.maximum(h @ params["w2"] + params["b2"], 0.0)
    h = jnp.maximum(h @ params["w3"] + params["b3"], 0.0)
    return jax.nn.sigmoid(h @ params["w4"] + params["b4"])


if __name__ == "__main__":
    key = jax.random.PRNGKey(0)
    input_size = 32

    kx1, kx2, kx3, kp = jax.random.split(key, 4)
    params = init_params(kp, input_size)

    # 1) Tiny batch, single block, f32 operands -> tight tolerance.
    x1 = jax.random.normal(kx1, (8, input_size), jnp.float32)
    o1 = jax.block_until_ready(
        mlp_sigmoid_head(x1, params, compute_dtype=jnp.float32))
    r1 = mlp_reference(x1, params)
    assert o1.shape == (8, 1)
    assert jnp.allclose(o1, r1, atol=1e-5, rtol=1e-5), "mismatch (small batch)"

    # 2) Ragged batch (not a multiple of 8), still one block, no host pad.
    x2 = jax.random.normal(kx2, (37, input_size), jnp.float32)
    o2 = jax.block_until_ready(
        mlp_sigmoid_head(x2, params, compute_dtype=jnp.float32))
    r2 = mlp_reference(x2, params)
    assert o2.shape == (37, 1)
    assert jnp.allclose(o2, r2, atol=1e-5, rtol=1e-5), "mismatch (ragged batch)"

    # 3) Multi-tile path with an even grid and a partial final tile
    #    (cap lowered to force 4 steps of 640 rows over 2080 rows).
    x3 = jax.random.normal(kx3, (2080, input_size), jnp.float32)
    o3 = jax.block_until_ready(
        mlp_sigmoid_head(x3, params, max_tile_b=1024, compute_dtype=jnp.float32))
    r3 = mlp_reference(x3, params)
    assert o3.shape == (2080, 1)
    assert jnp.allclose(o3, r3, atol=1e-5, rtol=1e-5), "mismatch (tiled batch)"

    # 4) Default bf16-operand path (f32 accumulation) -> looser tolerance.
    o4 = jax.block_until_ready(mlp_sigmoid_head(x3, params, max_tile_b=1024))
    assert o4.shape == (2080, 1)
    assert jnp.allclose(o4, r3, atol=2e-2, rtol=2e-2), "mismatch (bf16 path)"

    print("KERNEL_OK")
</pallas_src>

<mosaic_0001>
module attributes {stable_mosaic.version = 11 : i64} {
  func.func @mlp_sigmoid_kernel(%arg0: i32, %arg1: memref<8x32xf32, #tpu.memory_space<vmem>>, %arg2: memref<32x128xf32, #tpu.memory_space<vmem>>, %arg3: memref<1x128xf32, #tpu.memory_space<vmem>>, %arg4: memref<128x64xf32, #tpu.memory_space<vmem>>, %arg5: memref<1x64xf32, #tpu.memory_space<vmem>>, %arg6: memref<64x32xf32, #tpu.memory_space<vmem>>, %arg7: memref<1x32xf32, #tpu.memory_space<vmem>>, %arg8: memref<1x32xf32, #tpu.memory_space<vmem>>, %arg9: memref<1x1xf32, #tpu.memory_space<smem>>, %arg10: memref<1x8xf32, #tpu.memory_space<vmem>>) attributes {dimension_semantics = [#tpu.dimension_semantics<parallel>], iteration_bounds = array<i64: 1>, scalar_prefetch = 0 : i64, scratch_operands = 0 : i64, tpu.core_type = #tpu.core_type<tc>, window_params = [{transform_indices = @transform_0, window_bounds = array<i64: 8, 32>}, {pipeline_mode = #tpu.pipeline_mode<synchronous>, transform_indices = @transform_1, window_bounds = array<i64: 32, 128>}, {pipeline_mode = #tpu.pipeline_mode<synchronous>, transform_indices = @transform_2, window_bounds = array<i64: 1, 128>}, {pipeline_mode = #tpu.pipeline_mode<synchronous>, transform_indices = @transform_3, window_bounds = array<i64: 128, 64>}, {pipeline_mode = #tpu.pipeline_mode<synchronous>, transform_indices = @transform_4, window_bounds = array<i64: 1, 64>}, {pipeline_mode = #tpu.pipeline_mode<synchronous>, transform_indices = @transform_5, window_bounds = array<i64: 64, 32>}, {pipeline_mode = #tpu.pipeline_mode<synchronous>, transform_indices = @transform_6, window_bounds = array<i64: 1, 32>}, {pipeline_mode = #tpu.pipeline_mode<synchronous>, transform_indices = @transform_7, window_bounds = array<i64: 1, 32>}, {transform_indices = @transform_8, window_bounds = array<i64: 1, 1>}, {transform_indices = @transform_9, window_bounds = array<i64: 1, 8>}]} {
    %c0 = arith.constant 0 : index
    %c0_0 = arith.constant 0 : index
    %0 = vector.load %arg1[%c0, %c0_0] : memref<8x32xf32, #tpu.memory_space<vmem>>, vector<8x32xf32>
    %c0_1 = arith.constant 0 : index
    %c0_2 = arith.constant 0 : index
    %1 = vector.load %arg2[%c0_1, %c0_2] : memref<32x128xf32, #tpu.memory_space<vmem>>, vector<32x128xf32>
    %cst = arith.constant dense<0.000000e+00> : vector<8x128xf32>
    %2 = tpu.matmul %0, %1, %cst {dimension_numbers = #tpu.dot_dimension_numbers<[1], [0], [0], [1], [0, 0, 1, 1], [], []>} : vector<8x32xf32>, vector<32x128xf32>, vector<8x128xf32> -> vector<8x128xf32>
    %c0_3 = arith.constant 0 : index
    %c0_4 = arith.constant 0 : index
    %3 = vector.load %arg3[%c0_3, %c0_4] : memref<1x128xf32, #tpu.memory_space<vmem>>, vector<1x128xf32>
    %4 = vector.broadcast %3 : vector<1x128xf32> to vector<8x128xf32>
    %5 = arith.addf %2, %4 : vector<8x128xf32>
    %cst_5 = arith.constant 0.000000e+00 : f32
    %6 = vector.broadcast %cst_5 : f32 to vector<8x128xf32>
    %7 = arith.maximumf %5, %6 : vector<8x128xf32>
    %c0_6 = arith.constant 0 : index
    %c0_7 = arith.constant 0 : index
    %8 = vector.load %arg4[%c0_6, %c0_7] : memref<128x64xf32, #tpu.memory_space<vmem>>, vector<128x64xf32>
    %cst_8 = arith.constant dense<0.000000e+00> : vector<8x64xf32>
    %9 = tpu.matmul %7, %8, %cst_8 {dimension_numbers = #tpu.dot_dimension_numbers<[1], [0], [0], [1], [0, 0, 1, 1], [], []>} : vector<8x128xf32>, vector<128x64xf32>, vector<8x64xf32> -> vector<8x64xf32>
    %c0_9 = arith.constant 0 : index
    %c0_10 = arith.constant 0 : index
    %10 = vector.load %arg5[%c0_9, %c0_10] : memref<1x64xf32, #tpu.memory_space<vmem>>, vector<1x64xf32>
    %11 = vector.broadcast %10 : vector<1x64xf32> to vector<8x64xf32>
    %12 = arith.addf %9, %11 : vector<8x64xf32>
    %cst_11 = arith.constant 0.000000e+00 : f32
    %13 = vector.broadcast %cst_11 : f32 to vector<8x64xf32>
    %14 = arith.maximumf %12, %13 : vector<8x64xf32>
    %c0_12 = arith.constant 0 : index
    %c0_13 = arith.constant 0 : index
    %15 = vector.load %arg6[%c0_12, %c0_13] : memref<64x32xf32, #tpu.memory_space<vmem>>, vector<64x32xf32>
    %cst_14 = arith.constant dense<0.000000e+00> : vector<8x32xf32>
    %16 = tpu.matmul %14, %15, %cst_14 {dimension_numbers = #tpu.dot_dimension_numbers<[1], [0], [0], [1], [0, 0, 1, 1], [], []>} : vector<8x64xf32>, vector<64x32xf32>, vector<8x32xf32> -> vector<8x32xf32>
    %c0_15 = arith.constant 0 : index
    %c0_16 = arith.constant 0 : index
    %17 = vector.load %arg7[%c0_15, %c0_16] : memref<1x32xf32, #tpu.memory_space<vmem>>, vector<1x32xf32>
    %18 = vector.broadcast %17 : vector<1x32xf32> to vector<8x32xf32>
    %19 = arith.addf %16, %18 : vector<8x32xf32>
    %cst_17 = arith.constant 0.000000e+00 : f32
    %20 = vector.broadcast %cst_17 : f32 to vector<8x32xf32>
    %21 = arith.maximumf %19, %20 : vector<8x32xf32>
    %c0_18 = arith.constant 0 : index
    %c0_19 = arith.constant 0 : index
    %22 = vector.load %arg8[%c0_18, %c0_19] : memref<1x32xf32, #tpu.memory_space<vmem>>, vector<1x32xf32>
    %23 = vector.broadcast %22 : vector<1x32xf32> to vector<8x32xf32>
    %24 = arith.mulf %21, %23 : vector<8x32xf32>
    %cst_20 = arith.constant dense<0.000000e+00> : vector<8xf32>
    %25 = vector.multi_reduction <add>, %24, %cst_20 [1] : vector<8x32xf32> to vector<8xf32>
    %26 = vector.shape_cast %25 : vector<8xf32> to vector<8x1xf32>
    %c0_21 = arith.constant 0 : index
    %c0_22 = arith.constant 0 : index
    %27 = memref.load %arg9[%c0_21, %c0_22] : memref<1x1xf32, #tpu.memory_space<smem>>
    %28 = vector.broadcast %27 : f32 to vector<8x1xf32>
    %29 = arith.addf %26, %28 : vector<8x1xf32>
    %30 = arith.negf %29 : vector<8x1xf32>
    %31 = math.exp %30 : vector<8x1xf32>
    %cst_23 = arith.constant 1.000000e+00 : f32
    %32 = vector.broadcast %cst_23 : f32 to vector<8x1xf32>
    %33 = arith.addf %32, %31 : vector<8x1xf32>
    %34 = arith.divf %32, %33 : vector<8x1xf32>
    %35 = vector.shape_cast %34 : vector<8x1xf32> to vector<1x8xf32>
    %c0_24 = arith.constant 0 : index
    %c0_25 = arith.constant 0 : index
    %36 = vector.load %arg10[%c0_24, %c0_25] : memref<1x8xf32, #tpu.memory_space<vmem>>, vector<1x8xf32>
    tpu.vector_store %arg10[%c0_24, %c0_25], %35 {strides = array<i32>} : memref<1x8xf32, #tpu.memory_space<vmem>>, vector<1x8xf32>,
    return
  }
  func.func @transform_0(%arg0: i32) -> (i32, i32) {
    %c0_i32 = arith.constant 0 : i32
    %c0_i32_0 = arith.constant 0 : i32
    return %arg0, %c0_i32 : i32, i32
  }
  func.func @transform_1(%arg0: i32) -> (i32, i32) {
    %c0_i32 = arith.constant 0 : i32
    %c0_i32_0 = arith.constant 0 : i32
    %c0_i32_1 = arith.constant 0 : i32
    return %c0_i32, %c0_i32_0 : i32, i32
  }
  func.func @transform_2(%arg0: i32) -> (i32, i32) {
    %c0_i32 = arith.constant 0 : i32
    %c0_i32_0 = arith.constant 0 : i32
    %c0_i32_1 = arith.constant 0 : i32
    return %c0_i32, %c0_i32_0 : i32, i32
  }
  func.func @transform_3(%arg0: i32) -> (i32, i32) {
    %c0_i32 = arith.constant 0 : i32
    %c0_i32_0 = arith.constant 0 : i32
    %c0_i32_1 = arith.constant 0 : i32
    return %c0_i32, %c0_i32_0 : i32, i32
  }
  func.func @transform_4(%arg0: i32) -> (i32, i32) {
    %c0_i32 = arith.constant 0 : i32
    %c0_i32_0 = arith.constant 0 : i32
    %c0_i32_1 = arith.constant 0 : i32
    return %c0_i32, %c0_i32_0 : i32, i32
  }
  func.func @transform_5(%arg0: i32) -> (i32, i32) {
    %c0_i32 = arith.constant 0 : i32
    %c0_i32_0 = arith.constant 0 : i32
    %c0_i32_1 = arith.constant 0 : i32
    return %c0_i32, %c0_i32_0 : i32, i32
  }
  func.func @transform_6(%arg0: i32) -> (i32, i32) {
    %c0_i32 = arith.constant 0 : i32
    %c0_i32_0 = arith.constant 0 : i32
    %c0_i32_1 = arith.constant 0 : i32
    return %c0_i32, %c0_i32_0 : i32, i32
  }
  func.func @transform_7(%arg0: i32) -> (i32, i32) {
    %c0_i32 = arith.constant 0 : i32
    %c0_i32_0 = arith.constant 0 : i32
    %c0_i32_1 = arith.constant 0 : i32
    return %c0_i32, %c0_i32_0 : i32, i32
  }
  func.func @transform_8(%arg0: i32) -> (i32, i32) {
    %c0_i32 = arith.constant 0 : i32
    %c0_i32_0 = arith.constant 0 : i32
    %c0_i32_1 = arith.constant 0 : i32
    return %c0_i32, %c0_i32_0 : i32, i32
  }
  func.func @transform_9(%arg0: i32) -> (i32, i32) {
    %c0_i32 = arith.constant 0 : i32
    %c0_i32_0 = arith.constant 0 : i32
    return %c0_i32, %arg0 : i32, i32
  }
}

</mosaic_0001>

<bundles_post_ra>
// kernel: tpu_custom_call.1
= control target key start
LH: loop header
LB: loop body
LE: loop exit
PB: predicated region body
PF: predicated region fallthrough
CT: control target
= control target key end

     0   :  { %v526_v3 = vmov 0.0|0.0   ;;  %vm527_vm0 = vmmov 0   ;;  %v528_v6 = vmov 0.0   ;;  %s713_s0 = inlined_call_operand.vmem [shape: f32[8,32], index: 0, kind: input, shape index: {}]   ;;  %s714_s1 = inlined_call_operand.vmem [shape: f32[32,128], index: 1, kind: input, shape index: {}]   ;;  %s715_s2 = inlined_call_operand.vmem [shape: f32[1,128], index: 2, kind: input, shape index: {}]   ;;  %s716_s3 = inlined_call_operand.vmem [shape: f32[128,64], index: 3, kind: input, shape index: {}]   ;;  %s717_s4 = inlined_call_operand.vmem [shape: f32[1,64], index: 4, kind: input, shape index: {}]   ;;  %s718_s5 = inlined_call_operand.vmem [shape: f32[64,32], index: 5, kind: input, shape index: {}]   ;;  %s719_s6 = inlined_call_operand.vmem [shape: f32[1,32], index: 6, kind: input, shape index: {}]   ;;  %s720_s7 = inlined_call_operand.vmem [shape: f32[1,32], index: 7, kind: input, shape index: {}]   ;;  %s721_s8 = inlined_call_operand.<no memory space> [shape: f32[1,1], index: 8, kind: input, shape index: {}]   ;;  %s722_s9 = inlined_call_operand.hbm [shape: f32[1,8], index: 9, kind: output, shape index: {}]  }
   0x1   :  { %v35_v0 = vld [vmem:[%s714_s1] sm:$0xff]  ;;  %v36_v1 = vld [vmem:[%s714_s1 + $0x8] sm:$0xff]  ;;  %v37_v2 = vld [vmem:[%s714_s1 + $0x10] sm:$0xff]  ;;  %452 = vmatprep.subr.bf16.mxu0 %v526_v3  ;;  %395 = vmatprep.mubr.msk.f32.mxu0 %vm527_vm0, %v528_v6 }
   0x2   :  { %v453_v4 = vpack.c.bf16 %v36_v1, %v35_v0  ;;  %v38_v5 = vld [vmem:[%s714_s1 + $0x18] sm:$0xff]  ;;  %v121_v7 = vld [vmem:[%s716_s3] sm:$0xff]  ;;  %458 = vmatprep.subr.bf16.mxu1 %v526_v3  ;;  %v122_v8 = vld [vmem:[%s716_s3 + $0x8] sm:$0xff]  ;;  %430 = vmatprep.mubr.msk.f32.mxu1 %vm527_vm0, %v528_v6 }
   0x3   :  { %v123_v9 = vld [vmem:[%s716_s3 + $0x10] sm:$0xff]  ;;  %v124_v10 = vld [vmem:[%s716_s3 + $0x18] sm:$0xff]  ;;  %v456_v11 = vpack.c.bf16 %v38_v5, %v37_v2  ;;  %v459_v12 = vpack.c.bf16 %v122_v8, %v121_v7  ;;  %v125_v14 = vld [vmem:[%s716_s3 + $0x20] sm:$0xff] }
   0x4   :  { %454 = vmatpush3.bf16.msra.mxu0 %v453_v4  ;;  %v462_v13 = vpack.c.bf16 %v124_v10, %v123_v9  ;;  %v126_v15 = vld [vmem:[%s716_s3 + $0x28] sm:$0xff] }
   0x5   :  { %455 = vmatprep.subr.bf16.mxu0 %v526_v3  ;;  %460 = vmatpush3.bf16.msra.mxu1 %v459_v12 }
   0x6   :  { %461 = vmatprep.subr.bf16.mxu1 %v526_v3 }
   0x7   :  { %15 = vsyncpa [#allocation4], 0  ;;  %v34_v16 = vld [vmem:[%s713_s0] sm:$0xff]  ;;  %vm46_vm1 = vcmask 261120   ;;  %v465_v17 = vpack.c.bf16 %v126_v15, %v125_v14  ;;  %v127_v18 = vld [vmem:[%s716_s3 + $0x30] sm:$0xff]  ;;  %vm230_vm2 = vcmask 523264   ;;  %v317_v63 = vstv %s721_s8 }
   0x8   :  { %457 = vmatpush3.bf16.msra.mxu0 %v456_v11  ;;  %v128_v19 = vld [vmem:[%s716_s3 + $0x38] sm:$0xff]  ;;  %v129_v21 = vld [vmem:[%s716_s3 + $0x40] sm:$0xff]  ;;  %v130_v22 = vld [vmem:[%s716_s3 + $0x48] sm:$0xff]  ;;  %v326_v5 = vlaneseq  ;;  %vm333_vm3 = vcmask 57344  }
   0x9   :  { %482 = vmatprep.subr.bf16.mxu0 %v526_v3  ;;  %463 = vmatpush3.bf16.msra.mxu1 %v462_v13  ;;  %v468_v20 = vpack.c.bf16 %v128_v19, %v127_v18  ;;  %v471_v23 = vpack.c.bf16 %v130_v22, %v129_v21  ;;  %v131_v24 = vld [vmem:[%s716_s3 + $0x50] sm:$0xff]  ;;  %v132_v25 = vld [vmem:[%s716_s3 + $0x58] sm:$0xff]  ;;  %v133_v27 = vld [vmem:[%s716_s3 + $0x60] sm:$0xff] }
   0xa   :  { %464 = vmatprep.subr.bf16.mxu1 %v526_v3  ;;  %v474_v26 = vpack.c.bf16 %v132_v25, %v131_v24  ;;  %v134_v28 = vld [vmem:[%s716_s3 + $0x68] sm:$0xff]  ;;  %v135_v30 = vld [vmem:[%s716_s3 + $0x70] sm:$0xff]  ;;  %v136_v31 = vld [vmem:[%s716_s3 + $0x78] sm:$0xff]  ;;  %v329_v7 = vshrl.u32 %v326_v5, 7 }
   0xb   :  { %396 = vmatmul.mubr.msk.f32.vlgmr.msra.gmra.mrb[0].mxu0 %vm46_vm1, %v34_v16  ;;  %v477_v29 = vpack.c.bf16 %v134_v28, %v133_v27  ;;  %v480_v32 = vpack.c.bf16 %v136_v31, %v135_v30  ;;  %v215_v33 = vld [vmem:[%s718_s5] sm:$0xff]  ;;  %v216_v34 = vld [vmem:[%s718_s5 + $0x8] sm:$0xff]  ;;  %v217_v35 = vld [vmem:[%s718_s5 + $0x10] sm:$0xff] }
   0xc   :  { %449 = vmatprep.mubr.msk.f32.mxu0 %vm527_vm0, %v528_v6  ;;  %v483_v36 = vpack.c.bf16 %v216_v34, %v215_v33  ;;  %v218_v37 = vld [vmem:[%s718_s5 + $0x18] sm:$0xff]  ;;  %v219_v39 = vld [vmem:[%s718_s5 + $0x20] sm:$0xff]  ;;  %v220_v40 = vld [vmem:[%s718_s5 + $0x28] sm:$0xff]  ;;  %v327_v6 = vand.u32 127, %v326_v5 }
   0xd   :  { %466 = vmatpush3.bf16.msra.mxu1 %v465_v17  ;;  %v486_v38 = vpack.c.bf16 %v218_v37, %v217_v35  ;;  %v489_v41 = vpack.c.bf16 %v220_v40, %v219_v39  ;;  %v349_v42 = vld [vmem:[%s715_s2] ss:$0 sm:$0xff]  ;;  %v221_v47 = vld [vmem:[%s718_s5 + $0x30] sm:$0xff]  ;;  %v222_v48 = vld [vmem:[%s718_s5 + $0x38] sm:$0xff] }
   0xe   :  { %467 = vmatprep.subr.bf16.mxu1 %v526_v3  ;;  %484 = vmatpush3.bf16.msra.mxu0 %v483_v36  ;;  %v492_v49 = vpack.c.bf16 %v222_v48, %v221_v47  ;;  %v351_v50 = vld [vmem:[%s717_s4] ss:$0 sm:$0xff]  ;;  %v330_v8 = vsub.s32 %v327_v6, %v329_v7 }
   0xf   :  { %485 = vmatprep.subr.bf16.mxu0 %v526_v3  ;;  %v352_v55 = vld [vmem:[%s719_s6] ss:$0 sm:$0xff]  ;;  %s529_s6 = smov [#allocation3]  }
  0x10   :  { %v354_v59 = vld [vmem:[%s720_s7] ss:$0 sm:$0xff]  ;;  %s341_s7 = sshll.u32 %s529_s6, 4  ;;  %s342_s7 = int_to_ptr.vmem [resolvable:$true] %s341_s7 }
  0x11   :  { %469 = vmatpush3.bf16.msra.mxu1 %v468_v20  ;;  %s502_s26 = scalar_lea.vmem %s342_s7, 16  ;;  %s506_s8 = scalar_lea.vmem %s342_s7, 32 }
  0x12   :  { %470 = vmatprep.subr.bf16.mxu1 %v526_v3  ;;  %487 = vmatpush3.bf16.msra.mxu0 %v486_v38  ;;  %p503_p0 = scmp.ne.s32.totalorder %s342_s7, %s502_s26  ;;  %p507_p1 = scmp.lt.s32.totalorder %s342_s7, %s342_s7 }
  0x13   :  { %488 = vmatprep.subr.bf16.mxu0 %v526_v3  ;;  %p508_p2 = scmp.lt.s32.totalorder %s506_s8, %s502_s26 }
  0x15   :  { %472 = vmatpush3.bf16.msra.mxu1 %v471_v23  ;;  %p509_p3 = por %p508_p2, %p507_p1 }
  0x16   :  { %473 = vmatprep.subr.bf16.mxu1 %v526_v3  ;;  %490 = vmatpush3.bf16.msra.mxu0 %v489_v41 }
  0x17   :  { %491 = vmatprep.subr.bf16.mxu0 %v526_v3  ;;  %p510_p4 = pnand %p509_p3, %p503_p0 }
  0x19   :  { %475 = vmatpush3.bf16.msra.mxu1 %v474_v26 }
  0x1a   :  { %476 = vmatprep.subr.bf16.mxu1 %v526_v3  ;;  %493 = vmatpush3.bf16.msra.mxu0 %v492_v49 }
  0x1d   :  { %478 = vmatpush3.bf16.msra.mxu1 %v477_v29 }
  0x1e   :  { %479 = vmatprep.subr.bf16.mxu1 %v526_v3 }
  0x21   :  { %481 = vmatpush3.bf16.msra.mxu1 %v480_v32 }
  0xde   :  { %v116_v43 = vpop.f32.mrb[0].mxu0 }
  0xdf   :  { %v117_v44 = vadd.f32 %v349_v42, %v116_v43  ;;  %v397_v45 = vpop.f32.mrb[1].mxu0 }
  0xe1   :  { %v120_v46 = vmax.f32 %v117_v44, 0.0 }
  0xe3   :  { %431 = vmatmul.mubr.f32.vlgmr.msra.gmra.mrb[0].mxu1 %v120_v46 }
 0x1b6   :  { %v210_v51 = vpop.f32.mrb[0].mxu1 }
 0x1b7   :  { %v211_v52 = vadd.f32 %v351_v50, %v210_v51  ;;  %v432_v53 = vpop.f32.mrb[1].mxu1 }
 0x1b9   :  { %v214_v54 = vmax.f32 %v211_v52, 0.0 }
 0x1bb   :  { %450 = vmatmul.mubr.msk.f32.vlgmr.msra.gmra.mrb[2].mxu0 %vm230_vm2, %v214_v54 }
 0x28e   :  { %v300_v56 = vpop.f32.mrb[2].mxu0 }
 0x28f   :  { %v301_v57 = vadd.f32 %v352_v55, %v300_v56  ;;  %v451_v58 = vpop.f32.mrb[3].mxu0 }
 0x291   :  { %v304_v60 = vmax.f32 %v301_v57, 0.0 }
 0x293   :  { %v312_v61 = vmul.f32 %v354_v59, %v304_v60 }
 0x295   :  { %v313_v62 = vsel %vm46_vm1, %v312_v61, 0.0 }
 0x296   :  { %314 = vadd.xlane.f32.xlu0 %v313_v62 }
 0x323   :  { %v315_v0 = vpop.xlane.xlu0 %314 }
 0x324   :  { %v318_v1 = vadd.f32 %v317_v63, %v315_v0 }
 0x326   :  { %v355_v2 = vmul.f32 -1.442695, %v318_v1 }
 0x328   :  { %498 = vpow2.f32 %v355_v2 }
 0x332   :  { %v499_v3 = vpop.eup %498 }
 0x333   :  { %v322_v4 = vadd.f32 1.0, %v499_v3 }
 0x335   :  { %500 = vrcp.f32 %v322_v4 }
 0x33f   :  { %v501_v9 = vpop.eup %500 }
 0x340   :  { %v331_v10 = vrot.slane %v501_v9, %v330_v8 }
 0x342   :  { %334 = vst.msk [vmem:[#allocation3] sm:$0x1] %vm333_vm3, %v331_v10 }
 0x343   :  { %513 = shalt.err (!%p510_p4)
}
 0x344   :  { %s514_s29 = scalar_lea.hbm %s722_s9, 16 }
 0x345   :  { %p515_p5 = scmp.ne.s32.totalorder %s722_s9, %s514_s29  ;;  %p518_p6 = scmp.lt.u32.totalorder %s514_s29, %s722_s9 }
 0x347   :  { %p520_p7 = pnand %p518_p6, %p515_p5 }
 0x349   :  { %523 = shalt.err (!%p520_p7)
}
 0x34a   :  { %344 = dma.vmem_to_hbm [thread:$0]  %s342_s7, 16, %s722_s9, [#allocation4]  }
 0x34b   :  { %524 = dma.done.wait [#allocation4], 16  }
 0x34c   :  { %525 = vsyncadd [#allocation4], 4294967280 }
 0x34d   :  { %348 = vsyncpa [#allocation4], 1 }

</bundles_post_ra>
